<compile_context>
chip_gen: v7x
topology: tpu7x:2x2x1
jax: 0.10.0
libtpu: 0.0.40
codegen_flags: <defaults>
</compile_context>

<pallas_src>
import jax
import jax.numpy as jnp
from jax.experimental import pallas as pl
from jax.experimental.pallas import tpu as pltpu


def _recon_loss_kernel(d_ref, x_ref, s_ref, o_ref, acc_ref):
    """Grid = (F tiles, N tiles, K tiles); K (reduction) is the innermost axis."""
    k = pl.program_id(2)

    # Zero the f32 matmul accumulator at the start of every K sweep.
    @pl.when(k == 0)
    def _():
        acc_ref[...] = jnp.zeros_like(acc_ref)

    # MXU hot path: partial D @ X for this (i, j) output tile, f32 accumulation.
    acc_ref[...] += jnp.dot(d_ref[...], x_ref[...],
                            preferred_element_type=jnp.float32)

    # Epilogue on the last K step: residual, square, fold only the sublane (row)
    # axis -> lane-dense per-column partial sums.  Each (i, j) writes its own
    # output block exactly once, so no cross-grid-step accumulator is needed and
    # the i / j axes can run on separate TensorCores.
    @pl.when(k == pl.num_programs(2) - 1)
    def _():
        resid = acc_ref[...] - s_ref[...].astype(jnp.float32)
        o_ref[0, 0] = jnp.sum(resid * resid, axis=0, keepdims=True)


def _pick_tile(dim, target, quantum):
    """Largest tile <= target that divides `dim` and is a multiple of `quantum`.
    Falls back to the full dimension (always a legal block shape)."""
    if dim <= target:
        return dim
    t = (target // quantum) * quantum
    while t >= quantum:
        if dim % t == 0:
            return t
        t -= quantum
    return dim


def reconstruction_loss(D, X, S, *, tf=256, tn=1024, tk=1024, matmul_dtype=None):
    """Scalar reconstruction loss  sum((D @ X - S)**2).

    matmul_dtype: optional dtype (e.g. jnp.bfloat16) used for D and X in the MXU
      matmul (accumulation stays float32).  bf16 halves D/X HBM traffic and runs at
      native MXU rate on v6e/v7x, but is an accuracy trade-off vs. the f32 reference.
    """
    F, K = D.shape
    K2, N = X.shape
    assert K == K2 and S.shape == (F, N), (D.shape, X.shape, S.shape)

    if matmul_dtype is not None:
        D = D.astype(matmul_dtype)
        X = X.astype(matmul_dtype)
    S = S.astype(jnp.float32)

    sub_q = 16 if D.dtype == jnp.bfloat16 else 8
    tf = _pick_tile(F, tf, sub_q)
    tn = _pick_tile(N, tn, 128)
    tk = _pick_tile(K, tk, 128)

    gi, gj, gk = F // tf, N // tn, K // tk

    partials = pl.pallas_call(
        _recon_loss_kernel,
        out_shape=jax.ShapeDtypeStruct((gi, gj, 1, tn), jnp.float32),
        grid_spec=pltpu.PrefetchScalarGridSpec(
            num_scalar_prefetch=0,
            grid=(gi, gj, gk),
            in_specs=[
                pl.BlockSpec((tf, tk), lambda i, j, k: (i, k)),   # D
                pl.BlockSpec((tk, tn), lambda i, j, k: (k, j)),   # X
                pl.BlockSpec((tf, tn), lambda i, j, k: (i, j)),   # S (k-invariant -> not re-DMA'd across k)
            ],
            out_specs=pl.BlockSpec((1, 1, 1, tn), lambda i, j, k: (i, j, 0, 0)),
            scratch_shapes=[pltpu.VMEM((tf, tn), jnp.float32)],
        ),
        compiler_params=pltpu.CompilerParams(
            # Per-(i, j) output blocks -> i and j are independent and can be split
            # across TensorCores (v7x megacore); K is the serial reduction axis.
            dimension_semantics=("parallel", "parallel", "arbitrary"),
            vmem_limit_bytes=64 * 1024 * 1024,
        ),
    )(D, X, S)

    # Tiny final reduction (cross-lane + cross-tile) in plain JAX.
    return jnp.sum(partials)


if __name__ == "__main__":
    key = jax.random.PRNGKey(0)
    kd, kx, ks = jax.random.split(key, 3)

    # Small 2-D shapes consistent with the module: D [F, K], X [K, N], S [F, N].
    F, K, N = 64, 128, 256
    D = jax.random.normal(kd, (F, K), dtype=jnp.float32)
    X = jax.random.normal(kx, (K, N), dtype=jnp.float32)
    S = jax.random.normal(ks, (F, N), dtype=jnp.float32)

    # Full-precision path (matches the PyTorch module's f32 semantics).
    loss_f32 = jax.block_until_ready(reconstruction_loss(D, X, S))
    ref_f32 = jnp.sum(jnp.square(D @ X - S))
    assert jnp.allclose(loss_f32, ref_f32, rtol=1e-5, atol=1e-3), (loss_f32, ref_f32)

    # bf16-matmul path (perf option for v6e/v7x; compared against a bf16 reference).
    loss_bf16 = jax.block_until_ready(
        reconstruction_loss(D, X, S, matmul_dtype=jnp.bfloat16))
    ref_bf16 = jnp.sum(jnp.square(
        jnp.dot(D.astype(jnp.bfloat16), X.astype(jnp.bfloat16),
                preferred_element_type=jnp.float32) - S))
    assert jnp.allclose(loss_bf16, ref_bf16, rtol=1e-2, atol=1e-1), (loss_bf16, ref_bf16)

    print("KERNEL_OK")
</pallas_src>

<mosaic_0001>
module attributes {stable_mosaic.version = 11 : i64} {
  func.func @_recon_loss_kernel(%arg0: i32, %arg1: i32, %arg2: i32, %arg3: memref<64x128xf32, #tpu.memory_space<vmem>>, %arg4: memref<128x256xf32, #tpu.memory_space<vmem>>, %arg5: memref<64x256xf32, #tpu.memory_space<vmem>>, %arg6: memref<1x1x1x256xf32, #tpu.memory_space<vmem>>, %arg7: memref<64x256xf32, #tpu.memory_space<vmem>>) attributes {dimension_semantics = [#tpu.dimension_semantics<parallel>, #tpu.dimension_semantics<parallel>, #tpu.dimension_semantics<arbitrary>], iteration_bounds = array<i64: 1, 1, 1>, scalar_prefetch = 0 : i64, scratch_operands = 1 : i64, tpu.core_type = #tpu.core_type<tc>, window_params = [{transform_indices = @transform_0, window_bounds = array<i64: 64, 128>}, {transform_indices = @transform_1, window_bounds = array<i64: 128, 256>}, {transform_indices = @transform_2, window_bounds = array<i64: 64, 256>}, {transform_indices = @transform_3, window_bounds = array<i64: 1, 1, 1, 256>}]} {
    %c0_i32 = arith.constant 0 : i32
    %0 = arith.cmpi eq, %arg2, %c0_i32 : i32
    %1 = arith.extui %0 : i1 to i32
    %c0_i32_0 = arith.constant 0 : i32
    %2 = arith.cmpi ne, %1, %c0_i32_0 : i32
    scf.if %2 {
      %cst_10 = arith.constant 0.000000e+00 : f32
      %12 = vector.broadcast %cst_10 : f32 to vector<64x256xf32>
      %c0_11 = arith.constant 0 : index
      %c0_12 = arith.constant 0 : index
      %13 = vector.load %arg7[%c0_11, %c0_12] : memref<64x256xf32, #tpu.memory_space<vmem>>, vector<64x256xf32>
      tpu.vector_store %arg7[%c0_11, %c0_12], %12 {strides = array<i32>} : memref<64x256xf32, #tpu.memory_space<vmem>>, vector<64x256xf32>,
    } else {
    }
    %c0 = arith.constant 0 : index
    %c0_1 = arith.constant 0 : index
    %3 = vector.load %arg7[%c0, %c0_1] : memref<64x256xf32, #tpu.memory_space<vmem>>, vector<64x256xf32>
    %c0_2 = arith.constant 0 : index
    %c0_3 = arith.constant 0 : index
    %4 = vector.load %arg3[%c0_2, %c0_3] : memref<64x128xf32, #tpu.memory_space<vmem>>, vector<64x128xf32>
    %c0_4 = arith.constant 0 : index
    %c0_5 = arith.constant 0 : index
    %5 = vector.load %arg4[%c0_4, %c0_5] : memref<128x256xf32, #tpu.memory_space<vmem>>, vector<128x256xf32>
    %cst = arith.constant dense<0.000000e+00> : vector<64x256xf32>
    %6 = tpu.matmul %4, %5, %cst {dimension_numbers = #tpu.dot_dimension_numbers<[1], [0], [0], [1], [0, 0, 1, 1], [], []>} : vector<64x128xf32>, vector<128x256xf32>, vector<64x256xf32> -> vector<64x256xf32>
    %7 = arith.addf %3, %6 : vector<64x256xf32>
    %c0_6 = arith.constant 0 : index
    %c0_7 = arith.constant 0 : index
    %8 = vector.load %arg7[%c0_6, %c0_7] : memref<64x256xf32, #tpu.memory_space<vmem>>, vector<64x256xf32>
    tpu.vector_store %arg7[%c0_6, %c0_7], %7 {strides = array<i32>} : memref<64x256xf32, #tpu.memory_space<vmem>>, vector<64x256xf32>,
    %c0_i32_8 = arith.constant 0 : i32
    %9 = arith.cmpi eq, %arg2, %c0_i32_8 : i32
    %10 = arith.extui %9 : i1 to i32
    %c0_i32_9 = arith.constant 0 : i32
    %11 = arith.cmpi ne, %10, %c0_i32_9 : i32
    scf.if %11 {
      %c0_10 = arith.constant 0 : index
      %c0_11 = arith.constant 0 : index
      %12 = vector.load %arg7[%c0_10, %c0_11] : memref<64x256xf32, #tpu.memory_space<vmem>>, vector<64x256xf32>
      %c0_12 = arith.constant 0 : index
      %c0_13 = arith.constant 0 : index
      %13 = vector.load %arg5[%c0_12, %c0_13] : memref<64x256xf32, #tpu.memory_space<vmem>>, vector<64x256xf32>
      %14 = arith.subf %12, %13 : vector<64x256xf32>
      %15 = arith.mulf %14, %14 : vector<64x256xf32>
      %cst_14 = arith.constant dense<0.000000e+00> : vector<256xf32>
      %16 = vector.multi_reduction <add>, %15, %cst_14 [0] : vector<64x256xf32> to vector<256xf32>
      %17 = vector.shape_cast %16 : vector<256xf32> to vector<1x256xf32>
      %c0_15 = arith.constant 0 : index
      %c0_16 = arith.constant 0 : index
      %c0_17 = arith.constant 0 : index
      %c0_18 = arith.constant 0 : index
      %18 = vector.load %arg6[%c0_15, %c0_16, %c0_17, %c0_18] : memref<1x1x1x256xf32, #tpu.memory_space<vmem>>, vector<1x1x1x256xf32>
      %19 = vector.shape_cast %18 : vector<1x1x1x256xf32> to vector<1x256xf32>
      %20 = vector.shape_cast %17 : vector<1x256xf32> to vector<1x1x1x256xf32>
      tpu.vector_store %arg6[%c0_15, %c0_16, %c0_17, %c0_18], %20 {strides = array<i32>} : memref<1x1x1x256xf32, #tpu.memory_space<vmem>>, vector<1x1x1x256xf32>,
    } else {
    }
    return
  }
  func.func @transform_0(%arg0: i32, %arg1: i32, %arg2: i32) -> (i32, i32) {
    %c0_i32 = arith.constant 0 : i32
    return %arg0, %arg2 : i32, i32
  }
  func.func @transform_1(%arg0: i32, %arg1: i32, %arg2: i32) -> (i32, i32) {
    %c0_i32 = arith.constant 0 : i32
    return %arg2, %arg1 : i32, i32
  }
  func.func @transform_2(%arg0: i32, %arg1: i32, %arg2: i32) -> (i32, i32) {
    %c0_i32 = arith.constant 0 : i32
    return %arg0, %arg1 : i32, i32
  }
  func.func @transform_3(%arg0: i32, %arg1: i32, %arg2: i32) -> (i32, i32, i32, i32) {
    %c0_i32 = arith.constant 0 : i32
    %c0_i32_0 = arith.constant 0 : i32
    %c0_i32_1 = arith.constant 0 : i32
    return %arg0, %arg1, %c0_i32, %c0_i32_0 : i32, i32, i32, i32
  }
}

</mosaic_0001>

<bundles_post_ra>
// kernel: tpu_custom_call.1
= control target key start
LH: loop header
LB: loop body
LE: loop exit
PB: predicated region body
PF: predicated region fallthrough
CT: control target
= control target key end

     0   :  { %8 = vsyncpa [#allocation4], 0  ;;  %s653_s0 = inlined_call_operand.hbm [shape: f32[64,128], index: 0, kind: input, shape index: {}]   ;;  %s654_s1 = inlined_call_operand.hbm [shape: f32[128,256], index: 1, kind: input, shape index: {}]   ;;  %s655_s2 = inlined_call_operand.hbm [shape: f32[64,256], index: 2, kind: input, shape index: {}]   ;;  %s656_s3 = inlined_call_operand.hbm [shape: f32[1,1,1,256], index: 3, kind: output, shape index: {}]  }
   0x1   :  { %9 = vsyncpa [#allocation7], 0 }
   0x2   :  { %10 = vsyncpa [#allocation5], 0  ;;  %s561_s12 = smov [#allocation6]   ;;  %s467_s16 = scalar_lea.hbm %s654_s1, 4096 }
   0x3   :  { %s28_s13 = sshll.u32 %s561_s12, 4  ;;  %p468_p0 = scmp.ne.s32.totalorder %s654_s1, %s467_s16  ;;  %s29_s13 = int_to_ptr.vmem [resolvable:$true] %s28_s13 }
   0x4   :  { %p471_p1 = scmp.lt.u32.totalorder %s467_s16, %s654_s1 }
   0x6   :  { %p473_p2 = pnand %p471_p1, %p468_p0 }
   0x8   :  { %476 = shalt.err (!%p473_p2)
}
   0x9   :  { %s477_s21 = scalar_lea.vmem %s29_s13, 4096  ;;  %p482_p4 = scmp.lt.s32.totalorder %s29_s13, %s29_s13 }
   0xa   :  { %p478_p3 = scmp.ne.s32.totalorder %s29_s13, %s477_s21  ;;  %p483_p5 = scmp.lt.s32.totalorder %s477_s21, %s477_s21 }
   0xc   :  { %p484_p6 = por %p483_p5, %p482_p4 }
   0xe   :  { %p485_p7 = pnand %p484_p6, %p478_p3 }
  0x10   :  { %488 = shalt.err (!%p485_p7)
}
  0x11   :  { %s562_s22 = smov 256   ;;  %s563_s23 = smov 16  }
  0x12   :  { %34 = dma.hbm_to_vmem [thread:$0]  %s654_s1, 4096, %s29_s13, [#allocation7], %s562_s22, %s562_s22, %s563_s23  }
  0x13   :  { %s564_s26 = smov [#allocation3]   ;;  %s489_s30 = scalar_lea.hbm %s653_s0, 1024 }
  0x14   :  { %s16_s27 = sshll.u32 %s564_s26, 4  ;;  %p490_p8 = scmp.ne.s32.totalorder %s653_s0, %s489_s30  ;;  %s17_s27 = int_to_ptr.vmem [resolvable:$true] %s16_s27 }
  0x15   :  { %p493_p9 = scmp.lt.u32.totalorder %s489_s30, %s653_s0 }
  0x17   :  { %p495_p10 = pnand %p493_p9, %p490_p8 }
  0x19   :  { %498 = shalt.err (!%p495_p10)
}
  0x1a   :  { %s499_s8 = scalar_lea.vmem %s17_s27, 1024  ;;  %p504_p12 = scmp.lt.s32.totalorder %s17_s27, %s17_s27 }
  0x1b   :  { %p500_p11 = scmp.ne.s32.totalorder %s17_s27, %s499_s8  ;;  %p505_p13 = scmp.lt.s32.totalorder %s499_s8, %s499_s8 }
  0x1d   :  { %p506_p0 = por %p505_p13, %p504_p12 }
  0x1f   :  { %p507_p1 = pnand %p506_p0, %p500_p11 }
  0x21   :  { %510 = shalt.err (!%p507_p1)
}
  0x22   :  { %s565_s1 = smov 128   ;;  %s566_s9 = smov 8  }
  0x23   :  { %22 = dma.hbm_to_vmem [thread:$0]  %s653_s0, 1024, %s17_s27, [#allocation4], %s565_s1, %s565_s1, %s566_s9  }
  0x24   :  { %s567_s12 = smov [#allocation8]   ;;  %s511_s16 = scalar_lea.hbm %s655_s2, 2048 }
  0x25   :  { %s40_s13 = sshll.u32 %s567_s12, 4  ;;  %p512_p2 = scmp.ne.s32.totalorder %s655_s2, %s511_s16  ;;  %s41_s13 = int_to_ptr.vmem [resolvable:$true] %s40_s13 }
  0x26   :  { %p515_p3 = scmp.lt.u32.totalorder %s511_s16, %s655_s2 }
  0x28   :  { %p517_p4 = pnand %p515_p3, %p512_p2 }
  0x2a   :  { %520 = shalt.err (!%p517_p4)
}
  0x2b   :  { %s521_s21 = scalar_lea.vmem %s41_s13, 2048  ;;  %p526_p6 = scmp.lt.s32.totalorder %s41_s13, %s41_s13 }
  0x2c   :  { %p522_p5 = scmp.ne.s32.totalorder %s41_s13, %s521_s21  ;;  %p527_p7 = scmp.lt.s32.totalorder %s521_s21, %s521_s21 }
  0x2e   :  { %p528_p8 = por %p527_p7, %p526_p6 }
  0x30   :  { %p529_p9 = pnand %p528_p8, %p522_p5 }
  0x32   :  { %532 = shalt.err (!%p529_p9)
}
  0x33   :  { %46 = dma.hbm_to_vmem [thread:$0]  %s655_s2, 2048, %s41_s13, [#allocation7], %s562_s22, %s562_s22, %s563_s23  }
  0x34   :  { %555 = dma.done.wait [#allocation4], 1024  }
  0x35   :  { %556 = vsyncadd [#allocation4], 4294966272 }
  0x36   :  { %557 = dma.done.wait [#allocation7], 6144  }
  0x37   :  { %558 = vsyncadd [#allocation7], 4294961152  ;;  %v568_v0 = vmov 0.0   ;;  %v101_v1 = vld [vmem:[#allocation6 + $0x8] sm:$0xff]  ;;  %v103_v2 = vld [vmem:[#allocation6 + $0x18] sm:$0xff]  ;;  %s570_s2 = smov [#allocation9]  }
  0x38   :  { %196 = vmatprep.mubr.f32.mxu0 %v568_v0  ;;  %220 = vmatprep.mubr.f32.mxu1 %v568_v0  ;;  %v100_v3 = vld [vmem:[#allocation6] sm:$0xff]  ;;  %v409_v4 = vpack.c.bf16 %v103_v2, %v101_v1  ;;  %v102_v5 = vld [vmem:[#allocation6 + $0x10] sm:$0xff]  ;;  %v105_v6 = vld [vmem:[#allocation6 + $0x28] sm:$0xff]  ;;  %s399_s22 = sshll.u32 %s570_s2, 4  ;;  %s400_s22 = int_to_ptr.vmem [resolvable:$true] %s399_s22 }
  0x39   :  { %v107_v7 = vld [vmem:[#allocation6 + $0x38] sm:$0xff]  ;;  %v411_v8 = vpack.c.bf16 %v102_v5, %v100_v3  ;;  %v104_v10 = vld [vmem:[#allocation6 + $0x20] sm:$0xff]  ;;  %v106_v11 = vld [vmem:[#allocation6 + $0x30] sm:$0xff]  ;;  %s533_s23 = scalar_lea.vmem %s400_s22, 32  ;;  %p538_p11 = scmp.lt.s32.totalorder %s400_s22, %s400_s22 }
  0x3a   :  { %v413_v9 = vpack.c.bf16 %v107_v7, %v105_v6  ;;  %v109_v12 = vld [vmem:[#allocation6 + $0x48] sm:$0xff]  ;;  %410 = vmatprep.subr.bf16.mxu0 %v409_v4  ;;  %441 = vmatprep.subr.bf16.mxu1 %v409_v4  ;;  %v111_v13 = vld [vmem:[#allocation6 + $0x58] sm:$0xff]  ;;  %v415_v14 = vpack.c.bf16 %v106_v11, %v104_v10  ;;  %v108_v16 = vld [vmem:[#allocation6 + $0x40] sm:$0xff]  ;;  %p534_p10 = scmp.ne.s32.totalorder %s400_s22, %s533_s23  ;;  %p539_p12 = scmp.lt.s32.totalorder %s533_s23, %s533_s23 }
  0x3b   :  { %412 = vmatpush1.bf16.msra.mxu0 %v411_v8  ;;  %449 = vmatpush1.bf16.msra.mxu1 %v411_v8  ;;  %v417_v15 = vpack.c.bf16 %v111_v13, %v109_v12  ;;  %v110_v17 = vld [vmem:[#allocation6 + $0x50] sm:$0xff]  ;;  %v113_v18 = vld [vmem:[#allocation6 + $0x68] sm:$0xff]  ;;  %v115_v19 = vld [vmem:[#allocation6 + $0x78] sm:$0xff] }
  0x3c   :  { %414 = vmatprep.subr.bf16.mxu0 %v413_v9  ;;  %442 = vmatprep.subr.bf16.mxu1 %v413_v9  ;;  %v419_v20 = vpack.c.bf16 %v110_v17, %v108_v16  ;;  %v421_v21 = vpack.c.bf16 %v115_v19, %v113_v18  ;;  %v112_v22 = vld [vmem:[#allocation6 + $0x60] sm:$0xff]  ;;  %v114_v23 = vld [vmem:[#allocation6 + $0x70] sm:$0xff]  ;;  %v117_v24 = vld [vmem:[#allocation6 + $0x88] sm:$0xff]  ;;  %p540_p13 = por %p539_p12, %p538_p11 }
  0x3d   :  { %v119_v25 = vld [vmem:[#allocation6 + $0x98] sm:$0xff]  ;;  %v423_v26 = vpack.c.bf16 %v114_v23, %v112_v22  ;;  %v116_v28 = vld [vmem:[#allocation6 + $0x80] sm:$0xff]  ;;  %v118_v29 = vld [vmem:[#allocation6 + $0x90] sm:$0xff] }
  0x3e   :  { %v425_v27 = vpack.c.bf16 %v119_v25, %v117_v24  ;;  %v121_v30 = vld [vmem:[#allocation6 + $0xa8] sm:$0xff]  ;;  %v123_v31 = vld [vmem:[#allocation6 + $0xb8] sm:$0xff]  ;;  %v427_v32 = vpack.c.bf16 %v118_v29, %v116_v28  ;;  %v120_v34 = vld [vmem:[#allocation6 + $0xa0] sm:$0xff]  ;;  %p541_p0 = pnand %p540_p13, %p534_p10 }
  0x3f   :  { %416 = vmatpush1.bf16.msra.mxu0 %v415_v14  ;;  %450 = vmatpush1.bf16.msra.mxu1 %v415_v14  ;;  %v429_v33 = vpack.c.bf16 %v123_v31, %v121_v30  ;;  %v122_v35 = vld [vmem:[#allocation6 + $0xb0] sm:$0xff]  ;;  %v125_v36 = vld [vmem:[#allocation6 + $0xc8] sm:$0xff]  ;;  %v127_v37 = vld [vmem:[#allocation6 + $0xd8] sm:$0xff] }
  0x40   :  { %418 = vmatprep.subr.bf16.mxu0 %v417_v15  ;;  %443 = vmatprep.subr.bf16.mxu1 %v417_v15  ;;  %v431_v38 = vpack.c.bf16 %v122_v35, %v120_v34  ;;  %v433_v39 = vpack.c.bf16 %v127_v37, %v125_v36  ;;  %v124_v40 = vld [vmem:[#allocation6 + $0xc0] sm:$0xff]  ;;  %v126_v41 = vld [vmem:[#allocation6 + $0xd0] sm:$0xff]  ;;  %v129_v42 = vld [vmem:[#allocation6 + $0xe8] sm:$0xff] }
  0x41   :  { %v131_v43 = vld [vmem:[#allocation6 + $0xf8] sm:$0xff]  ;;  %v435_v44 = vpack.c.bf16 %v126_v41, %v124_v40  ;;  %v128_v46 = vld [vmem:[#allocation6 + $0xe0] sm:$0xff]  ;;  %v130_v47 = vld [vmem:[#allocation6 + $0xf0] sm:$0xff] }
  0x42   :  { %v437_v45 = vpack.c.bf16 %v131_v43, %v129_v42  ;;  %v439_v48 = vpack.c.bf16 %v130_v47, %v128_v46  ;;  %v92_v49 = vld [vmem:[#allocation3] sm:$0xff]  ;;  %v93_v51 = vld [vmem:[#allocation3 + $0x8] sm:$0xff]  ;;  %v94_v53 = vld [vmem:[#allocation3 + $0x10] sm:$0xff] }
  0x43   :  { %420 = vmatpush1.bf16.msra.mxu0 %v419_v20  ;;  %451 = vmatpush1.bf16.msra.mxu1 %v419_v20  ;;  %v96_v50 = vld [vmem:[#allocation3 + $0x20] sm:$0xff]  ;;  %v97_v52 = vld [vmem:[#allocation3 + $0x28] sm:$0xff]  ;;  %v98_v54 = vld [vmem:[#allocation3 + $0x30] sm:$0xff] }
  0x44   :  { %422 = vmatprep.subr.bf16.mxu0 %v421_v21  ;;  %444 = vmatprep.subr.bf16.mxu1 %v421_v21  ;;  %v95_v55 = vld [vmem:[#allocation3 + $0x18] sm:$0xff]  ;;  %v296_v58 = vld [vmem:[#allocation8] sm:$0xff]  ;;  %v297_v61 = vld [vmem:[#allocation8 + $0x8] sm:$0xff] }
  0x45   :  { %v99_v56 = vld [vmem:[#allocation3 + $0x38] sm:$0xff]  ;;  %v298_v63 = vld [vmem:[#allocation8 + $0x10] sm:$0xff]  ;;  %v301_v12 = vld [vmem:[#allocation8 + $0x28] sm:$0xff] }
  0x46   :  { %v299_v2 = vld [vmem:[#allocation8 + $0x18] sm:$0xff]  ;;  %v304_v22 = vld [vmem:[#allocation8 + $0x40] sm:$0xff]  ;;  %v302_v24 = vld [vmem:[#allocation8 + $0x30] sm:$0xff] }
  0x47   :  { %424 = vmatpush1.bf16.msra.mxu0 %v423_v26  ;;  %452 = vmatpush1.bf16.msra.mxu1 %v423_v26  ;;  %v305_v26 = vld [vmem:[#allocation8 + $0x48] sm:$0xff]  ;;  %v306_v29 = vld [vmem:[#allocation8 + $0x50] sm:$0xff]  ;;  %v307_v35 = vld [vmem:[#allocation8 + $0x58] sm:$0xff] }
  0x48   :  { %426 = vmatprep.subr.bf16.mxu0 %v425_v27  ;;  %445 = vmatprep.subr.bf16.mxu1 %v425_v27  ;;  %v303_v27 = vld [vmem:[#allocation8 + $0x38] sm:$0xff]  ;;  %v308_v41 = vld [vmem:[#allocation8 + $0x60] sm:$0xff]  ;;  %v310_v42 = vld [vmem:[#allocation8 + $0x70] sm:$0xff] }
  0x49   :  { %v311_v46 = vld [vmem:[#allocation8 + $0x78] sm:$0xff] }
  0x4b   :  { %428 = vmatpush1.bf16.msra.mxu0 %v427_v32  ;;  %453 = vmatpush1.bf16.msra.mxu1 %v427_v32 }
  0x4c   :  { %430 = vmatprep.subr.bf16.mxu0 %v429_v33  ;;  %446 = vmatprep.subr.bf16.mxu1 %v429_v33 }
  0x4f   :  { %432 = vmatpush1.bf16.msra.mxu0 %v431_v38  ;;  %454 = vmatpush1.bf16.msra.mxu1 %v431_v38 }
  0x50   :  { %434 = vmatprep.subr.bf16.mxu0 %v433_v39  ;;  %447 = vmatprep.subr.bf16.mxu1 %v433_v39 }
  0x53   :  { %436 = vmatpush1.bf16.msra.mxu0 %v435_v44  ;;  %455 = vmatpush1.bf16.msra.mxu1 %v435_v44 }
  0x54   :  { %438 = vmatprep.subr.bf16.mxu0 %v437_v45  ;;  %448 = vmatprep.subr.bf16.mxu1 %v437_v45  ;;  %v309_v45 = vld [vmem:[#allocation8 + $0x68] sm:$0xff] }
  0x57   :  { %440 = vmatpush1.bf16.msra.mxu0 %v439_v48  ;;  %456 = vmatpush1.bf16.msra.mxu1 %v439_v48 }
  0x5a   :  { %197 = vmatmul.mubr.f32.vlgmr.msra.gmra.mrb[0].mxu0 %v92_v49  ;;  %221 = vmatmul.mubr.f32.vlgmr.msra.gmra.mrb[0].mxu1 %v96_v50 }
  0x5b   :  { %202 = vmatprep.mubr.f32.mxu0 %v568_v0  ;;  %226 = vmatprep.mubr.f32.mxu1 %v568_v0 }
  0x5e   :  { %203 = vmatmul.mubr.f32.gmra.mrb[2].mxu0 %v93_v51  ;;  %227 = vmatmul.mubr.f32.gmra.mrb[2].mxu1 %v97_v52 }
  0x5f   :  { %208 = vmatprep.mubr.f32.mxu0 %v568_v0  ;;  %232 = vmatprep.mubr.f32.mxu1 %v568_v0 }
  0x62   :  { %209 = vmatmul.mubr.f32.gmra.mrb[4].mxu0 %v94_v53  ;;  %233 = vmatmul.mubr.f32.gmra.mrb[4].mxu1 %v98_v54 }
  0x63   :  { %214 = vmatprep.mubr.f32.mxu0 %v568_v0  ;;  %238 = vmatprep.mubr.f32.mxu1 %v568_v0  ;;  %v300_v0 = vld [vmem:[#allocation8 + $0x20] sm:$0xff] }
  0x66   :  { %215 = vmatmul.mubr.f32.gmra.mrb[6].mxu0 %v95_v55  ;;  %239 = vmatmul.mubr.f32.gmra.mrb[6].mxu1 %v99_v56 }
 0x12d   :  { %v198_v57 = vpop.f32.mrb[0].mxu0  ;;  %v222_v59 = vpop.f32.mrb[0].mxu1 }
 0x12e   :  { %v200_v60 = vpop.f32.mrb[1].mxu0  ;;  %v224_v62 = vpop.f32.mrb[1].mxu1  ;;  %v312_v1 = vsub.f32 %v198_v57, %v296_v58  ;;  %v320_v32 = vsub.f32 %v222_v59, %v304_v22 }
 0x12f   :  { %v313_v3 = vsub.f32 %v200_v60, %v297_v61  ;;  %v321_v38 = vsub.f32 %v224_v62, %v305_v26 }
 0x130   :  { %v328_v10 = vmul.f32 %v312_v1, %v312_v1  ;;  %v336_v49 = vmul.f32 %v320_v32, %v320_v32 }
 0x131   :  { %v204_v4 = vpop.f32.mrb[2].mxu0  ;;  %v228_v5 = vpop.f32.mrb[2].mxu1  ;;  %v329_v13 = vmul.f32 %v313_v3, %v313_v3  ;;  %v337_v53 = vmul.f32 %v321_v38, %v321_v38 }
 0x132   :  { %v314_v6 = vsub.f32 %v204_v4, %v298_v63  ;;  %v206_v7 = vpop.f32.mrb[3].mxu0  ;;  %v230_v8 = vpop.f32.mrb[3].mxu1  ;;  %v322_v43 = vsub.f32 %v228_v5, %v306_v29 }
 0x133   :  { %v315_v9 = vsub.f32 %v206_v7, %v299_v2  ;;  %v323_v47 = vsub.f32 %v230_v8, %v307_v35 }
 0x134   :  { %v330_v11 = vmul.f32 %v314_v6, %v314_v6  ;;  %v338_v57 = vmul.f32 %v322_v43, %v322_v43 }
 0x135   :  { %v331_v14 = vmul.f32 %v315_v9, %v315_v9  ;;  %v210_v15 = vpop.f32.mrb[4].mxu0  ;;  %v234_v16 = vpop.f32.mrb[4].mxu1  ;;  %v339_v59 = vmul.f32 %v323_v47, %v323_v47 }
 0x136   :  { %v344_v17 = vadd.f32 %v330_v11, %v328_v10  ;;  %v316_v18 = vsub.f32 %v210_v15, %v300_v0  ;;  %v212_v19 = vpop.f32.mrb[5].mxu0  ;;  %v236_v20 = vpop.f32.mrb[5].mxu1  ;;  %v324_v51 = vsub.f32 %v234_v16, %v308_v41  ;;  %v569_v11 = vmov 1966171168  }
 0x137   :  { %v357_v21 = vadd.f32 %v331_v14, %v329_v13  ;;  %v317_v23 = vsub.f32 %v212_v19, %v301_v12  ;;  %v325_v55 = vsub.f32 %v236_v20, %v309_v45  ;;  %v374_v12 = vunpack.c.l.s4 %v569_v11 }
 0x138   :  { %v332_v25 = vmul.f32 %v316_v18, %v316_v18  ;;  %v340_v61 = vmul.f32 %v324_v51, %v324_v51  ;;  %v376_v13 = vlaneseq }
 0x139   :  { %v333_v28 = vmul.f32 %v317_v23, %v317_v23  ;;  %v216_v30 = vpop.f32.mrb[6].mxu0  ;;  %v240_v31 = vpop.f32.mrb[6].mxu1  ;;  %v341_v1 = vmul.f32 %v325_v55, %v325_v55  ;;  %v375_v18 = vunpack.c.0.s8 %v374_v12 }
 0x13a   :  { %v345_v33 = vadd.f32 %v344_v17, %v332_v25  ;;  %v318_v34 = vsub.f32 %v216_v30, %v302_v24  ;;  %v218_v36 = vpop.f32.mrb[7].mxu0  ;;  %v242_v37 = vpop.f32.mrb[7].mxu1  ;;  %v326_v52 = vsub.f32 %v240_v31, %v310_v42  ;;  %v377_v19 = vshrl.u32 %v376_v13, 7 }
 0x13b   :  { %v358_v39 = vadd.f32 %v357_v21, %v333_v28  ;;  %v319_v40 = vsub.f32 %v218_v36, %v303_v27  ;;  %v327_v56 = vsub.f32 %v242_v37, %v311_v46  ;;  %vm390_vm0 = vcmp.lt.s32.totalorder %v376_v13, 256 }
 0x13c   :  { %v334_v44 = vmul.f32 %v318_v34, %v318_v34  ;;  %v342_v63 = vmul.f32 %v326_v52, %v326_v52  ;;  %v378_v24 = vsub.s32 %v375_v18, %v377_v19 }
 0x13d   :  { %v335_v48 = vmul.f32 %v319_v40, %v319_v40  ;;  %v343_v3 = vmul.f32 %v327_v56, %v327_v56 }
 0x13e   :  { %v346_v50 = vadd.f32 %v345_v33, %v334_v44 }
 0x13f   :  { %v359_v54 = vadd.f32 %v358_v39, %v335_v48 }
 0x140   :  { %v347_v58 = vadd.f32 %v346_v50, %v336_v49 }
 0x141   :  { %v360_v60 = vadd.f32 %v359_v54, %v337_v53 }
 0x142   :  { %v348_v62 = vadd.f32 %v347_v58, %v338_v57 }
 0x143   :  { %v361_v2 = vadd.f32 %v360_v60, %v339_v59 }
 0x144   :  { %v349_v4 = vadd.f32 %v348_v62, %v340_v61 }
 0x145   :  { %v362_v5 = vadd.f32 %v361_v2, %v341_v1 }
 0x146   :  { %v350_v6 = vadd.f32 %v349_v4, %v342_v63 }
 0x147   :  { %v363_v7 = vadd.f32 %v362_v5, %v343_v3 }
 0x148   :  { %v351_v8 = vrot.slane %v350_v6, 4 }
 0x149   :  { %v364_v9 = vrot.slane %v363_v7, 4 }
 0x14a   :  { %v352_v0 = vadd.f32 %v351_v8, %v350_v6 }
 0x14b   :  { %v365_v10 = vadd.f32 %v364_v9, %v363_v7 }
 0x14c   :  { %v353_v14 = vrot.slane %v352_v0, 2 }
 0x14d   :  { %v366_v15 = vrot.slane %v365_v10, 2 }
 0x14e   :  { %v354_v16 = vadd.f32 %v353_v14, %v352_v0 }
 0x14f   :  { %v367_v17 = vadd.f32 %v366_v15, %v365_v10 }
 0x150   :  { %v355_v20 = vrot.slane %v354_v16, 1 }
 0x151   :  { %v368_v21 = vrot.slane %v367_v17, 1 }
 0x152   :  { %v356_v22 = vadd.f32 %v355_v20, %v354_v16 }
 0x153   :  { %v369_v23 = vadd.f32 %v368_v21, %v367_v17 }
 0x155   :  { %v372_v25 = vcombine.low %v356_v22, %v369_v23 }
 0x157   :  { %v379_v26 = vrot.slane %v372_v25, %v378_v24 }
 0x159   :  { %v386_v27 = vrot.slane %v379_v26, %v378_v24 }
 0x15b   :  { %392 = vst.msk [vmem:[#allocation9] sm:$0x3] %vm390_vm0, %v386_v27 }
 0x15c   :  { %544 = shalt.err (!%p541_p0)
}
 0x15d   :  { %s545_s27 = scalar_lea.hbm %s656_s3, 32 }
 0x15e   :  { %p546_p1 = scmp.ne.s32.totalorder %s656_s3, %s545_s27  ;;  %p549_p2 = scmp.lt.u32.totalorder %s545_s27, %s656_s3 }
 0x160   :  { %p551_p3 = pnand %p549_p2, %p546_p1 }
 0x162   :  { %554 = shalt.err (!%p551_p3)
}
 0x163   :  { %402 = dma.vmem_to_hbm [thread:$0]  %s400_s22, 32, %s656_s3, [#allocation5]  }
 0x164   :  { %559 = dma.done.wait [#allocation5], 32  }
 0x165   :  { %560 = vsyncadd [#allocation5], 4294967264 }
 0x166   :  { %406 = vsyncpa [#allocation4], 1 }
 0x167   :  { %407 = vsyncpa [#allocation7], 1 }
 0x168   :  { %408 = vsyncpa [#allocation5], 1 }

</bundles_post_ra>
